<compile_context>
chip_gen: v7x
topology: tpu7x:2x2x1
jax: 0.10.0
libtpu: 0.0.40
codegen_flags: <defaults>
</compile_context>

<pallas_src>
import functools
import math

import jax
import jax.numpy as jnp
from jax.experimental import pallas as pl
from jax.experimental.pallas import tpu as pltpu


def _round_up(x, m):
    return ((x + m - 1) // m) * m


@functools.lru_cache(maxsize=None)
def _vmem_budget_bytes():
    """Per-TensorCore VMEM budget (~75% of capacity, leaves compiler headroom)."""
    cap = 64 * 1024 * 1024  # conservative fallback (v7x per-TC capacity)
    try:
        info = pltpu.get_tpu_info()
        cap = int(getattr(info, "vmem_capacity_bytes", cap))
    except Exception:
        pass
    return (cap * 3) // 4


# ---------------------------------------------------------------------------
# Path 1: table fits in VMEM -> resident table, one-hot matmul gather on MXU.
# ---------------------------------------------------------------------------
def _embed_resident_kernel(ids_ref, table_ref, o_ref, *, scale, max_int, fold_scale):
    # ids_ref:   (TQ, 1)            int32 token ids for this block (VMEM)
    # table_ref: (max_int, d_embed) whole embedding table (VMEM, single copy)
    # o_ref:     (TQ, d_embed)      scaled output tile
    tq = ids_ref.shape[0]
    vocab_iota = jax.lax.broadcasted_iota(jnp.int32, (tq, max_int), 1)
    eq = ids_ref[...] == vocab_iota                                     # (TQ, V)
    if fold_scale:
        # f32 table: fold sqrt(d_embed) into the one-hot -> no epilogue multiply.
        onehot = jnp.where(eq, jnp.float32(scale), jnp.float32(0.0))
        rows = jnp.dot(onehot, table_ref[...],
                       preferred_element_type=jnp.float32)              # (TQ, D)
        o_ref[...] = rows.astype(o_ref.dtype)
    else:
        # bf16 (or other) table: exact 0/1 one-hot in table dtype, f32 accumulate,
        # apply the scale at f32 precision after accumulation.
        onehot = eq.astype(table_ref.dtype)
        rows = jnp.dot(onehot, table_ref[...],
                       preferred_element_type=jnp.float32)
        o_ref[...] = (rows * jnp.float32(scale)).astype(o_ref.dtype)


def _embed_resident(ids, table, scale, vmem_budget):
    max_int, d_embed = table.shape
    n = ids.shape[0]
    itemsize = table.dtype.itemsize
    table_bytes = max_int * d_embed * itemsize

    # Table is single-buffered (whole-array VMEM operand); size the token block
    # so (2x output tile + one-hot intermediate) fits in the remaining budget.
    avail = int(vmem_budget * 0.9) - table_bytes
    tq = 8
    for cand in (1024, 512, 256, 128, 64, 32, 16, 8):
        need = 2 * cand * d_embed * itemsize      # double-buffered output tile
        need += cand * max_int * 4                # one-hot intermediate (f32 bound)
        need += 4 * cand * 4                      # ids blocks (tiny)
        if need <= avail:
            tq = cand
            break
    tq = min(tq, _round_up(n, 8))
    n_pad = _round_up(n, tq)
    ids_pad = jnp.pad(ids, (0, n_pad - n)).reshape(n_pad, 1)

    kernel = functools.partial(
        _embed_resident_kernel, scale=scale, max_int=max_int,
        fold_scale=(table.dtype == jnp.float32))

    return pl.pallas_call(
        kernel,
        out_shape=jax.ShapeDtypeStruct((n_pad, d_embed), table.dtype),
        grid=(n_pad // tq,),
        in_specs=[
            pl.BlockSpec((tq, 1), lambda i: (i, 0)),
            # Whole table as a VMEM-resident operand: copied HBM->VMEM once,
            # not double-buffered by the grid pipeline.
            pl.BlockSpec(memory_space=pltpu.MemorySpace.VMEM),
        ],
        out_specs=pl.BlockSpec((tq, d_embed), lambda i: (i, 0)),
        compiler_params=pltpu.CompilerParams(
            dimension_semantics=("parallel",),
            vmem_limit_bytes=vmem_budget),
    )(ids_pad, table)


# ---------------------------------------------------------------------------
# Path 2: large table -> double-buffered per-row DMA gather from HBM.
# ---------------------------------------------------------------------------
def _embed_hbm_gather_kernel(ids_ref, table_hbm, o_ref, rows, sem, *, scale, tq):
    # ids_ref:   (n_pad,) int32 token ids, scalar-prefetched into SMEM.
    # table_hbm: (max_int, d_embed) embedding table left in HBM (pl.ANY).
    # o_ref:     (TQ, d_embed) output tile (VMEM, auto-pipelined).
    # rows:      (2, TQ, d_embed) VMEM gather scratch (double-buffered).
    # sem:       DMA((2,)) semaphores, one per scratch slot.
    i = pl.program_id(0)
    n_blocks = pl.num_programs(0)
    slot = i & 1

    def issue_block(block_idx, dst_slot):
        base = pl.multiple_of(block_idx * tq, tq)

        def _start(r, carry):
            idx = ids_ref[base + r]
            pltpu.make_async_copy(
                table_hbm.at[pl.ds(idx, 1), :],
                rows.at[dst_slot, pl.ds(r, 1), :],
                sem.at[dst_slot],
            ).start()
            return carry

        # Partially unrolled: descriptor issue is scalar-unit bound.
        jax.lax.fori_loop(0, tq, _start, 0, unroll=8)

    # Pipeline priming: the very first block's row DMAs are issued here.
    @pl.when(i == 0)
    def _():
        issue_block(i, slot)

    # Prefetch the NEXT block's rows into the other slot before any compute,
    # so its gather latency overlaps this block's scale/store/writeback.
    # (Scalar id reads happen before the wait -> no sst->sld forwarding break.)
    @pl.when(i + 1 < n_blocks)
    def _():
        issue_block(i + 1, 1 - slot)

    # Single wait covering the whole (TQ, d_embed) slot: the TQ per-row copies
    # all signal sem[slot] and their byte counts sum to exactly this descriptor.
    pltpu.make_async_copy(
        table_hbm.at[pl.ds(0, tq), :],
        rows.at[slot],
        sem.at[slot],
    ).wait()

    o_ref[...] = (rows[slot].astype(jnp.float32) * scale).astype(o_ref.dtype)


def _embed_hbm_gather(ids, table, scale, vmem_budget):
    max_int, d_embed = table.shape
    n = ids.shape[0]
    itemsize = table.dtype.itemsize
    bytes_per_row = d_embed * itemsize

    # VMEM footprint: 2 gather-scratch slots + 2 double-buffered output tiles
    # = 4 * tq * bytes_per_row.  Size tq from the per-generation budget.
    tq_cap = (int(vmem_budget * 0.85) // (4 * bytes_per_row)) // 8 * 8
    tq = max(8, min(2048, tq_cap, _round_up(n, 8)))
    # The single-wait descriptor references table rows [0, tq); keep it in
    # bounds (vocabularies smaller than 8 rows are not expected on this path).
    if max_int >= 8:
        tq = min(tq, (max_int // 8) * 8)
    n_pad = _round_up(n, tq)
    # TODO(synk): for multi-million-token calls, feed ids as a blocked SMEM
    # input per grid step (1-D scalar-prefetch SMEM pads to next_pow2(4N)).
    ids_pad = jnp.pad(ids, (0, n_pad - n))

    return pl.pallas_call(
        functools.partial(_embed_hbm_gather_kernel, scale=scale, tq=tq),
        out_shape=jax.ShapeDtypeStruct((n_pad, d_embed), table.dtype),
        grid_spec=pltpu.PrefetchScalarGridSpec(
            num_scalar_prefetch=1,                         # ids -> SMEM
            grid=(n_pad // tq,),
            in_specs=[pl.BlockSpec(memory_space=pl.ANY)],  # table stays in HBM
            out_specs=pl.BlockSpec((tq, d_embed), lambda i, ids_ref: (i, 0)),
            scratch_shapes=[
                pltpu.VMEM((2, tq, d_embed), table.dtype),
                pltpu.SemaphoreType.DMA((2,)),
            ],
        ),
        compiler_params=pltpu.CompilerParams(
            # "arbitrary": the cross-step DMA prefetch assumes in-order grid
            # execution on one core (megacore splitting would need per-core
            # pipeline priming).
            dimension_semantics=("arbitrary",),
            vmem_limit_bytes=vmem_budget),
    )(ids_pad, table)


# ---------------------------------------------------------------------------
# Public wrapper: forward pass of embedding_int.
# ---------------------------------------------------------------------------
def embedding_int_forward(x, table, *, force_hbm_gather=False):
    """Equivalent to: nn.Embedding(max_int, d_embed)(x) * sqrt(d_embed)."""
    b, s = x.shape
    max_int, d_embed = table.shape
    scale = float(math.sqrt(d_embed))

    # TODO(synk): nn.Embedding raises on out-of-range ids; TPU has no cheap
    # in-kernel bounds error, so ids are clamped to [0, max_int-1] instead.
    ids = jnp.clip(x.reshape(-1).astype(jnp.int32), 0, max_int - 1)
    n_tokens = ids.shape[0]

    vmem_budget = _vmem_budget_bytes()
    table_bytes = max_int * d_embed * table.dtype.itemsize
    # Resident path needs the (single-buffered) table plus at least the
    # smallest token tile's working set in VMEM.
    resident_fits = (table_bytes
                     + 2 * 8 * d_embed * table.dtype.itemsize
                     + 8 * max_int * 4) <= int(vmem_budget * 0.9)
    use_resident = (not force_hbm_gather
                    and table_bytes <= vmem_budget // 2
                    and resident_fits)

    if use_resident:
        out_flat = _embed_resident(ids, table, scale, vmem_budget)
    else:
        out_flat = _embed_hbm_gather(ids, table, scale, vmem_budget)

    return out_flat[:n_tokens].reshape(b, s, d_embed)


if __name__ == "__main__":
    # Small deterministic setup matching nn.Embedding(max_int, d_embed).
    max_int = 64
    d_embed = 128
    batch, seq = 2, 8

    key = jax.random.PRNGKey(0)
    k_table, k_idx = jax.random.split(key)

    table = jax.random.normal(k_table, (max_int, d_embed), dtype=jnp.float32)
    x = jax.random.randint(k_idx, (batch, seq), minval=0, maxval=max_int,
                           dtype=jnp.int32)

    ref = table[x] * math.sqrt(d_embed)

    # Primary path (VMEM-resident table; table is only 32 KiB here).
    out = jax.block_until_ready(embedding_int_forward(x, table))
    assert out.shape == (batch, seq, d_embed)
    assert jnp.allclose(out, ref, atol=1e-4, rtol=1e-5)

    # Also exercise the large-vocab HBM row-gather fallback on the same inputs.
    out_hbm = jax.block_until_ready(
        embedding_int_forward(x, table, force_hbm_gather=True))
    assert jnp.allclose(out_hbm, ref, atol=1e-4, rtol=1e-5)

    print("KERNEL_OK")
</pallas_src>

<mosaic_0001>
module attributes {stable_mosaic.version = 11 : i64} {
  func.func @_embed_resident_kernel(%arg0: i32, %arg1: memref<16x1xi32, #tpu.memory_space<vmem>>, %arg2: memref<64x128xf32, #tpu.memory_space<vmem>>, %arg3: memref<16x128xf32, #tpu.memory_space<vmem>>) attributes {dimension_semantics = [#tpu.dimension_semantics<parallel>], iteration_bounds = array<i64: 1>, scalar_prefetch = 0 : i64, scratch_operands = 0 : i64, tpu.core_type = #tpu.core_type<tc>, window_params = [{transform_indices = @transform_0, window_bounds = array<i64: 16, 1>}, {pipeline_mode = #tpu.pipeline_mode<synchronous>, transform_indices = @transform_1, window_bounds = array<i64: 64, 128>}, {transform_indices = @transform_2, window_bounds = array<i64: 16, 128>}]} {
    %0 = tpu.iota {dimensions = array<i32: 1>} : vector<16x64xi32>
    %c0 = arith.constant 0 : index
    %c0_0 = arith.constant 0 : index
    %1 = vector.load %arg1[%c0, %c0_0] : memref<16x1xi32, #tpu.memory_space<vmem>>, vector<16x1xi32>
    %2 = vector.broadcast %1 : vector<16x1xi32> to vector<16x64xi32>
    %3 = arith.cmpi eq, %2, %0 : vector<16x64xi32>
    %cst = arith.constant 11.3137083 : f32
    %cst_1 = arith.constant 0.000000e+00 : f32
    %4 = vector.broadcast %cst : f32 to vector<16x64xf32>
    %5 = vector.broadcast %cst_1 : f32 to vector<16x64xf32>
    %6 = arith.select %3, %4, %5 : vector<16x64xi1>, vector<16x64xf32>
    %c0_2 = arith.constant 0 : index
    %c0_3 = arith.constant 0 : index
    %7 = vector.load %arg2[%c0_2, %c0_3] : memref<64x128xf32, #tpu.memory_space<vmem>>, vector<64x128xf32>
    %cst_4 = arith.constant dense<0.000000e+00> : vector<16x128xf32>
    %8 = tpu.matmul %6, %7, %cst_4 {dimension_numbers = #tpu.dot_dimension_numbers<[1], [0], [0], [1], [0, 0, 1, 1], [], []>} : vector<16x64xf32>, vector<64x128xf32>, vector<16x128xf32> -> vector<16x128xf32>
    %c0_5 = arith.constant 0 : index
    %c0_6 = arith.constant 0 : index
    %9 = vector.load %arg3[%c0_5, %c0_6] : memref<16x128xf32, #tpu.memory_space<vmem>>, vector<16x128xf32>
    tpu.vector_store %arg3[%c0_5, %c0_6], %8 {strides = array<i32>} : memref<16x128xf32, #tpu.memory_space<vmem>>, vector<16x128xf32>,
    return
  }
  func.func @transform_0(%arg0: i32) -> (i32, i32) {
    %c0_i32 = arith.constant 0 : i32
    %c0_i32_0 = arith.constant 0 : i32
    return %arg0, %c0_i32 : i32, i32
  }
  func.func @transform_1(%arg0: i32) -> (i32, i32) {
    %c0_i32 = arith.constant 0 : i32
    %c0_i32_0 = arith.constant 0 : i32
    %c0_i32_1 = arith.constant 0 : i32
    return %c0_i32, %c0_i32_0 : i32, i32
  }
  func.func @transform_2(%arg0: i32) -> (i32, i32) {
    %c0_i32 = arith.constant 0 : i32
    %c0_i32_0 = arith.constant 0 : i32
    return %arg0, %c0_i32 : i32, i32
  }
}

</mosaic_0001>

<bundles_post_ra>
// kernel: tpu_custom_call.1
= control target key start
LH: loop header
LB: loop body
LE: loop exit
PB: predicated region body
PF: predicated region fallthrough
CT: control target
= control target key end

     0   :  { %7 = vsyncpa [#allocation3], 0  ;;  %s308_s0 = inlined_call_operand.vmem [shape: s32[16,1], index: 0, kind: input, shape index: {}]   ;;  %s309_s1 = inlined_call_operand.hbm [shape: f32[64,128], index: 1, kind: input, shape index: {}]   ;;  %s310_s2 = inlined_call_operand.hbm [shape: f32[16,128], index: 2, kind: output, shape index: {}]  }
   0x1   :  { %8 = vsyncpa [#allocation4], 0  ;;  %s251_s9 = smov [#allocation2]   ;;  %s203_s13 = scalar_lea.hbm %s309_s1, 1024 }
   0x2   :  { %s16_s10 = sshll.u32 %s251_s9, 4  ;;  %p204_p0 = scmp.ne.s32.totalorder %s309_s1, %s203_s13  ;;  %s17_s10 = int_to_ptr.vmem [resolvable:$true] %s16_s10 }
   0x3   :  { %p207_p1 = scmp.lt.u32.totalorder %s203_s13, %s309_s1 }
   0x5   :  { %p209_p2 = pnand %p207_p1, %p204_p0 }
   0x7   :  { %212 = shalt.err (!%p209_p2)
}
   0x8   :  { %s213_s18 = scalar_lea.vmem %s17_s10, 1024  ;;  %p218_p4 = scmp.lt.s32.totalorder %s17_s10, %s17_s10 }
   0x9   :  { %p214_p3 = scmp.ne.s32.totalorder %s17_s10, %s213_s18  ;;  %p219_p5 = scmp.lt.s32.totalorder %s213_s18, %s213_s18 }
   0xb   :  { %p220_p6 = por %p219_p5, %p218_p4 }
   0xd   :  { %p221_p7 = pnand %p220_p6, %p214_p3 }
   0xf   :  { %224 = shalt.err (!%p221_p7)
}
  0x10   :  { %s252_s19 = smov 128   ;;  %s253_s20 = smov 8  }
  0x11   :  { %22 = dma.hbm_to_vmem [thread:$0]  %s309_s1, 1024, %s17_s10, [#allocation3], %s252_s19, %s252_s19, %s253_s20  }
  0x12   :  { %247 = dma.done.wait [#allocation3], 1024  }
  0x13   :  { %248 = vsyncadd [#allocation3], 4294966272  ;;  %v254_v0 = vmov 0   ;;  %v28_v1 = vld [vmem:[%s308_s0] sm:$0xff]  ;;  %v41_v3 = vld [vmem:[#allocation2 + $0x8] sm:$0xff]  ;;  %v26_v15 = vlaneseq  ;;  %vm48_vm0 = vcmask 523264  }
  0x14   :  { %202 = vset.pattern.permute.xlu0 %v254_v0  ;;  %v40_v2 = vld [vmem:[#allocation2] sm:$0xff]  ;;  %v42_v4 = vld [vmem:[#allocation2 + $0x10] sm:$0xff]  ;;  %v43_v5 = vld [vmem:[#allocation2 + $0x18] sm:$0xff]  ;;  %v255_v18 = vmov 0.0  }
  0x15   :  { %31 = vperm.xlu0 %202, %v28_v1   ;;  %v29_v6 = vld [vmem:[%s308_s0 + $0x8] sm:$0xff]  ;;  %v180_v7 = vpack.c.bf16 %v41_v3, %v40_v2  ;;  %v184_v8 = vpack.c.bf16 %v43_v5, %v42_v4  ;;  %v44_v9 = vld [vmem:[#allocation2 + $0x20] sm:$0xff]  ;;  %v46_v12 = vld [vmem:[#allocation2 + $0x30] sm:$0xff]  ;;  %v27_v16 = vand.u32 127, %v26_v15  ;;  %s256_s0 = smov [#allocation5]  }
  0x16   :  { %v45_v10 = vld [vmem:[#allocation2 + $0x28] sm:$0xff]  ;;  %v47_v13 = vld [vmem:[#allocation2 + $0x38] sm:$0xff]  ;;  %s137_s1 = sshll.u32 %s256_s0, 4  ;;  %s138_s1 = int_to_ptr.vmem [resolvable:$true] %s137_s1 }
  0x17   :  { %181 = vmatprep.subr.bf16.mxu0 %v180_v7  ;;  %v188_v11 = vpack.c.bf16 %v45_v10, %v44_v9  ;;  %v192_v14 = vpack.c.bf16 %v47_v13, %v46_v12  ;;  %s225_s27 = scalar_lea.vmem %s138_s1, 256  ;;  %p230_p9 = scmp.lt.s32.totalorder %s138_s1, %s138_s1 }
  0x18   :  { %183 = vmatpush3.bf16.msra.mxu0 %v180_v7  ;;  %p226_p8 = scmp.ne.s32.totalorder %s138_s1, %s225_s27  ;;  %p231_p10 = scmp.lt.s32.totalorder %s225_s27, %s225_s27 }
  0x19   :  { %34 = vperm.xlu0 %202, %v29_v6   ;;  %185 = vmatprep.subr.bf16.mxu0 %v184_v8 }
  0x1a   :  { %p232_p11 = por %p231_p10, %p230_p9 }
  0x1c   :  { %187 = vmatpush3.bf16.msra.mxu0 %v184_v8  ;;  %p233_p12 = pnand %p232_p11, %p226_p8 }
  0x1d   :  { %189 = vmatprep.subr.bf16.mxu0 %v188_v11 }
  0x20   :  { %191 = vmatpush3.bf16.msra.mxu0 %v188_v11 }
  0x21   :  { %193 = vmatprep.subr.bf16.mxu0 %v192_v14 }
  0x24   :  { %195 = vmatpush3.bf16.msra.mxu0 %v192_v14 }
  0x94   :  { %v32_v17 = vpop.permute.xlu0 %31 }
  0x95   :  { %vm36_vm1 = vcmp.eq.s32.totalorder %v32_v17, %v27_v16 }
  0x96   :  { %v38_v19 = vsel %vm36_vm1, 11.313708, %v255_v18 }
  0x97   :  { %177 = vmatprep.mubr.msk.f32.mxu0 %vm48_vm0, %v38_v19 }
  0x98   :  { %v35_v20 = vpop.permute.xlu0 %34 }
  0x99   :  { %vm37_vm2 = vcmp.eq.s32.totalorder %v35_v20, %v27_v16 }
  0x9a   :  { %v39_v21 = vsel %vm37_vm2, 11.313708, %v255_v18 }
  0x9b   :  { %178 = vmatmul.mubr.msk.f32.vlgmr.msra.gmra.mrb[0].mxu0 %vm48_vm0, %v39_v21 }
 0x16e   :  { %v179_v22 = vpop.f32.mrb[0].mxu0 }
 0x16f   :  { %131 = vst [vmem:[#allocation5 + $0x8] sm:$0xff] %v179_v22  ;;  %v121_v23 = vpop.f32.mrb[1].mxu0 }
 0x170   :  { %130 = vst [vmem:[#allocation5] sm:$0xff] %v121_v23 }
 0x171   :  { %236 = shalt.err (!%p233_p12)
}
 0x172   :  { %s237_s30 = scalar_lea.hbm %s310_s2, 256 }
 0x173   :  { %p238_p13 = scmp.ne.s32.totalorder %s310_s2, %s237_s30  ;;  %p241_p0 = scmp.lt.u32.totalorder %s237_s30, %s310_s2 }
 0x175   :  { %p243_p1 = pnand %p241_p0, %p238_p13 }
 0x177   :  { %246 = shalt.err (!%p243_p1)
}
 0x178   :  { %143 = dma.vmem_to_hbm [thread:$0]  %s138_s1, 256, %s310_s2, [#allocation4], %s252_s19, %s252_s19, %s253_s20  }
 0x179   :  { %249 = dma.done.wait [#allocation4], 256  }
 0x17a   :  { %250 = vsyncadd [#allocation4], 4294967040 }
 0x17b   :  { %147 = vsyncpa [#allocation3], 1 }
 0x17c   :  { %148 = vsyncpa [#allocation4], 1 }

</bundles_post_ra>
